<compile_context>
chip_gen: v7x
topology: tpu7x:2x2x1
jax: 0.10.0
libtpu: 0.0.40
codegen_flags: <defaults>
</compile_context>

<pallas_src>
import functools

import jax
import jax.numpy as jnp
from jax import lax
from jax.experimental import pallas as pl
from jax.experimental.pallas import tpu as pltpu

_EPSILON = 1e-5

# Cross-generation-safe defaults (review: ~512 on v5e, 1024+ on v6e, <=1024 on
# v7x).  Per-step VMEM at these sizes stays ~25 MiB incl. double buffering.
_TM = 512    # rows of inputs_col per tile (sublane dim of the sim tile)
_TN = 1024   # rows of inputs_row per tile (lane dim of the sim tile)
_TK = 1024   # feature-dim slice fed to the MXU per grid step

# Budget for keeping the whole (tm, d_pad) inputs_col stripe resident in VMEM
# (double-buffered) across the j axis.
_COL_STRIPE_BUDGET_BYTES = 16 * 1024 * 1024
_VMEM_LIMIT_BYTES = 48 * 1024 * 1024


def _round_up(x, m):
    return ((x + m - 1) // m) * m


def _contrastive_loss_kernel(col_ref, row_ref, tcol_ref, trow_ref, out_ref,
                             sim_acc, row_acc, *, margin, n, m, tk,
                             col_resident):
    i = pl.program_id(0)
    j = pl.program_id(1)
    k = pl.program_id(2)
    nj = pl.num_programs(1)
    nk = pl.num_programs(2)

    @pl.when(k == 0)
    def _():
        sim_acc[...] = jnp.zeros_like(sim_acc)

    @pl.when(jnp.logical_and(j == 0, k == 0))
    def _():
        row_acc[...] = jnp.zeros_like(row_acc)

    # MXU: (tm, tk) x (tn, tk) contracted on the feature axis -> (tm, tn).
    # No in-kernel transpose of the row tile; accumulation in f32.
    if col_resident:
        # inputs_col stripe is resident across j/k; slice this step's K chunk.
        a = col_ref[:, pl.ds(pl.multiple_of(k * tk, tk), tk)]
    else:
        a = col_ref[...]
    sim_acc[...] += lax.dot_general(
        a, row_ref[...],
        dimension_numbers=(((1,), (1,)), ((), ())),
        preferred_element_type=jnp.float32)

    # Masks depend on the *full* dot product over D, so only apply them once
    # the k reduction for this (i, j) tile is complete.
    @pl.when(k == nk - 1)
    def _():
        sim = sim_acc[...]                               # (tm, tn) f32
        tm, tn = sim.shape
        # Tail rows/cols (block padding beyond the true n/m) carry garbage:
        # mask them out entirely.  n and m are static closure values.
        row_ids = i * tm + lax.broadcasted_iota(jnp.int32, (tm, tn), 0)
        col_ids = j * tn + lax.broadcasted_iota(jnp.int32, (tm, tn), 1)
        valid = (row_ids < n) & (col_ids < m)
        same = (tcol_ref[...] == trow_ref[...]) & valid  # (tm,1)==(1,tn)
        # pos/neg masks are disjoint -> one nested select per element.
        contrib = jnp.where(
            same,
            jnp.where(sim < (1.0 - _EPSILON), 1.0 - sim, 0.0),
            jnp.where(valid & (sim > margin), sim, 0.0))
        row_acc[...] += jnp.sum(contrib, axis=1, keepdims=True)

    @pl.when(jnp.logical_and(j == nj - 1, k == nk - 1))
    def _():
        out_ref[...] = row_acc[...]


def contrastive_loss(inputs_col, targets_col, inputs_row, target_row, margin,
                     *, compute_dtype=None):
    """Pallas TPU implementation of ContrastiveLoss.forward (returns scalar).

    compute_dtype=jnp.bfloat16 halves HBM/VMEM traffic and feeds the MXU at
    full rate (accumulation stays f32); note the 1-1e-5 / margin threshold
    compares then act on bf16-rounded similarities, a slight semantics change
    vs. the f32 PyTorch reference.
    """
    n, d = inputs_col.shape
    m, d2 = inputs_row.shape
    assert d == d2

    if compute_dtype is not None:
        inputs_col = inputs_col.astype(compute_dtype)
        inputs_row = inputs_row.astype(compute_dtype)
    else:
        inputs_row = inputs_row.astype(inputs_col.dtype)
    itemsize = jnp.dtype(inputs_col.dtype).itemsize

    # --- tile selection -----------------------------------------------------
    # MXU-friendly 128-multiples; keep >=2 i-tiles for medium/large N so the
    # "parallel" i axis can shard across the two v7x TensorCores.
    tm = min(_TM, _round_up(n, 128))
    if pl.cdiv(n, tm) == 1 and n > 256:
        tm = _round_up(pl.cdiv(n, 2), 128)
    tn = min(_TN, _round_up(m, 128))

    # Only the contraction (D) axis needs real zero padding; N/M tails are
    # masked in the epilogue instead of materializing padded copies in HBM.
    d_pad = _round_up(d, 128)
    tk = min(_TK, d_pad)
    while d_pad % tk != 0:      # largest 128-multiple <= _TK dividing d_pad
        tk -= 128
    if d_pad != d:
        inputs_col = jnp.pad(inputs_col, ((0, 0), (0, d_pad - d)))
        inputs_row = jnp.pad(inputs_row, ((0, 0), (0, d_pad - d)))

    tcol = targets_col.astype(jnp.int32).reshape(n, 1)
    trow = target_row.astype(jnp.int32).reshape(1, m)

    gi = pl.cdiv(n, tm)
    gj = pl.cdiv(m, tn)
    gk = d_pad // tk
    grid = (gi, gj, gk)

    # Keep the whole (tm, d_pad) inputs_col stripe resident across j/k when
    # its double-buffered footprint fits the budget (removes the J-fold
    # re-read of inputs_col from HBM).
    col_resident = (2 * tm * d_pad * itemsize) <= _COL_STRIPE_BUDGET_BYTES
    if col_resident:
        col_spec = pl.BlockSpec((tm, d_pad), lambda i, j, k: (i, 0))
    else:
        col_spec = pl.BlockSpec((tm, tk), lambda i, j, k: (i, k))

    kernel = functools.partial(
        _contrastive_loss_kernel, margin=float(margin), n=n, m=m, tk=tk,
        col_resident=col_resident)

    col_bytes = gi * tm * d_pad * itemsize * (1 if col_resident else gj)
    row_bytes = gi * gj * tn * d_pad * itemsize
    cost = pl.CostEstimate(
        flops=int(2 * (gi * tm) * (gj * tn) * d_pad),
        transcendentals=0,
        bytes_accessed=int(col_bytes + row_bytes + (n + m) * 4 + n * 4))

    per_row = pl.pallas_call(
        kernel,
        out_shape=jax.ShapeDtypeStruct((n, 1), jnp.float32),
        grid=grid,
        in_specs=[
            col_spec,                                         # inputs_col
            pl.BlockSpec((tn, tk), lambda i, j, k: (j, k)),   # inputs_row
            pl.BlockSpec((tm, 1), lambda i, j, k: (i, 0)),    # col labels
            pl.BlockSpec((1, tn), lambda i, j, k: (0, j)),    # row labels
        ],
        out_specs=pl.BlockSpec((tm, 1), lambda i, j, k: (i, 0)),
        scratch_shapes=[
            pltpu.VMEM((tm, tn), jnp.float32),   # similarity accumulator
            pltpu.VMEM((tm, 1), jnp.float32),    # per-row loss accumulator
        ],
        compiler_params=pltpu.CompilerParams(
            dimension_semantics=("parallel", "arbitrary", "arbitrary"),
            vmem_limit_bytes=_VMEM_LIMIT_BYTES),
        cost_estimate=cost,
    )(inputs_col, inputs_row, tcol, trow)

    # Tail rows beyond n never exist in the (n, 1) output (partial-block
    # writes past the array end are dropped), so a plain sum is exact.
    return jnp.sum(per_row) / jnp.float32(n)


def _reference_loss(inputs_col, targets_col, inputs_row, target_row, margin):
    """Pure-JAX reference mirroring the PyTorch forward()."""
    n = inputs_col.shape[0]
    sim = jnp.dot(inputs_col.astype(jnp.float32),
                  inputs_row.astype(jnp.float32).T,
                  precision=jax.lax.Precision.HIGHEST)
    same = targets_col[:, None] == target_row[None, :]
    pos_mask = same & (sim < 1.0 - _EPSILON)
    neg_mask = (~same) & (sim > margin)
    pos_loss = jnp.sum(jnp.where(pos_mask, 1.0 - sim, 0.0))
    neg_loss = jnp.sum(jnp.where(neg_mask, sim, 0.0))
    return (pos_loss + neg_loss) / n


if __name__ == "__main__":
    key = jax.random.PRNGKey(0)
    k1, k2, k3, k4 = jax.random.split(key, 4)

    # Small shapes consistent with the module: batch=8, embedding dim=32.
    n, d = 8, 32
    margin = 0.5

    # L2-normalized embeddings (cosine similarities), as typical for this loss.
    inputs_col = jax.random.normal(k1, (n, d), dtype=jnp.float32)
    inputs_col = inputs_col / jnp.linalg.norm(inputs_col, axis=1, keepdims=True)
    inputs_row = jax.random.normal(k2, (n, d), dtype=jnp.float32)
    inputs_row = inputs_row / jnp.linalg.norm(inputs_row, axis=1, keepdims=True)
    targets_col = jax.random.randint(k3, (n,), 0, 4, dtype=jnp.int32)
    target_row = jax.random.randint(k4, (n,), 0, 4, dtype=jnp.int32)

    loss = contrastive_loss(inputs_col, targets_col, inputs_row, target_row,
                            margin)
    loss = jax.block_until_ready(loss)
    ref = _reference_loss(inputs_col, targets_col, inputs_row, target_row,
                          margin)
    assert jnp.allclose(loss, ref, rtol=1e-4, atol=1e-4), (loss, ref)

    # Second check: exercises unpadded tail masking (300 % 128 != 0), multiple
    # row tiles (tm capped at 256 to keep 2 i-tiles) and the resident-col path.
    kb = jax.random.split(jax.random.PRNGKey(1), 4)
    n2, m2, d2 = 300, 300, 640
    margin2 = 0.3
    a = jax.random.normal(kb[0], (n2, d2), dtype=jnp.float32)
    a = a / jnp.linalg.norm(a, axis=1, keepdims=True)
    b = jax.random.normal(kb[1], (m2, d2), dtype=jnp.float32)
    b = b / jnp.linalg.norm(b, axis=1, keepdims=True)
    ta = jax.random.randint(kb[2], (n2,), 0, 8, dtype=jnp.int32)
    tb = jax.random.randint(kb[3], (m2,), 0, 8, dtype=jnp.int32)
    loss2 = jax.block_until_ready(contrastive_loss(a, ta, b, tb, margin2))
    ref2 = _reference_loss(a, ta, b, tb, margin2)
    assert jnp.allclose(loss2, ref2, rtol=1e-4, atol=1e-3), (loss2, ref2)

    # Third check: bf16 compute path (recommended perf mode).  Reference uses
    # the same bf16-rounded inputs so mask decisions match; looser tolerance
    # absorbs accumulation-order differences.
    a16 = a.astype(jnp.bfloat16).astype(jnp.float32)
    b16 = b.astype(jnp.bfloat16).astype(jnp.float32)
    loss3 = jax.block_until_ready(
        contrastive_loss(a16, ta, b16, tb, margin2,
                         compute_dtype=jnp.bfloat16))
    ref3 = _reference_loss(a16, ta, b16, tb, margin2)
    assert jnp.allclose(loss3, ref3, rtol=1e-2, atol=1e-2), (loss3, ref3)

    print("KERNEL_OK")
</pallas_src>

<mosaic_0001>
module attributes {stable_mosaic.version = 11 : i64} {
  func.func @_contrastive_loss_kernel(%arg0: i32, %arg1: i32, %arg2: i32, %arg3: memref<128x128xf32, #tpu.memory_space<vmem>>, %arg4: memref<128x128xf32, #tpu.memory_space<vmem>>, %arg5: memref<128x1xi32, #tpu.memory_space<vmem>>, %arg6: memref<1x128xi32, #tpu.memory_space<vmem>>, %arg7: memref<128x1xf32, #tpu.memory_space<vmem>>, %arg8: memref<128x128xf32, #tpu.memory_space<vmem>>, %arg9: memref<128x1xf32, #tpu.memory_space<vmem>>) attributes {dimension_semantics = [#tpu.dimension_semantics<parallel>, #tpu.dimension_semantics<arbitrary>, #tpu.dimension_semantics<arbitrary>], iteration_bounds = array<i64: 1, 1, 1>, scalar_prefetch = 0 : i64, scratch_operands = 2 : i64, tpu.core_type = #tpu.core_type<tc>, window_params = [{transform_indices = @transform_0, window_bounds = array<i64: 128, 128>}, {transform_indices = @transform_1, window_bounds = array<i64: 128, 128>}, {transform_indices = @transform_2, window_bounds = array<i64: 128, 1>}, {transform_indices = @transform_3, window_bounds = array<i64: 1, 128>}, {transform_indices = @transform_4, window_bounds = array<i64: 128, 1>}]} {
    %c0_i32 = arith.constant 0 : i32
    %0 = arith.cmpi eq, %arg2, %c0_i32 : i32
    %1 = arith.extui %0 : i1 to i32
    %c0_i32_0 = arith.constant 0 : i32
    %2 = arith.cmpi ne, %1, %c0_i32_0 : i32
    scf.if %2 {
      %cst_15 = arith.constant 0.000000e+00 : f32
      %25 = vector.broadcast %cst_15 : f32 to vector<128x128xf32>
      %c0_16 = arith.constant 0 : index
      %c0_17 = arith.constant 0 : index
      %26 = vector.load %arg8[%c0_16, %c0_17] : memref<128x128xf32, #tpu.memory_space<vmem>>, vector<128x128xf32>
      tpu.vector_store %arg8[%c0_16, %c0_17], %25 {strides = array<i32>} : memref<128x128xf32, #tpu.memory_space<vmem>>, vector<128x128xf32>,
    } else {
    }
    %c0_i32_1 = arith.constant 0 : i32
    %3 = arith.cmpi eq, %arg1, %c0_i32_1 : i32
    %c0_i32_2 = arith.constant 0 : i32
    %4 = arith.cmpi eq, %arg2, %c0_i32_2 : i32
    %5 = arith.andi %3, %4 : i1
    %6 = arith.extui %5 : i1 to i32
    %c0_i32_3 = arith.constant 0 : i32
    %7 = arith.cmpi ne, %6, %c0_i32_3 : i32
    scf.if %7 {
      %cst_15 = arith.constant 0.000000e+00 : f32
      %25 = vector.broadcast %cst_15 : f32 to vector<128x1xf32>
      %c0_16 = arith.constant 0 : index
      %c0_17 = arith.constant 0 : index
      %26 = vector.load %arg9[%c0_16, %c0_17] : memref<128x1xf32, #tpu.memory_space<vmem>>, vector<128x1xf32>
      tpu.vector_store %arg9[%c0_16, %c0_17], %25 {strides = array<i32>} : memref<128x1xf32, #tpu.memory_space<vmem>>, vector<128x1xf32>,
    } else {
    }
    %c128_i32 = arith.constant 128 : i32
    %8 = arith.muli %arg2, %c128_i32 : i32
    %9 = tpu.assume_multiple %8, 128 : i32
    %c0 = arith.constant 0 : index
    %10 = arith.index_cast %9 : i32 to index
    %11 = vector.load %arg3[%c0, %10] : memref<128x128xf32, #tpu.memory_space<vmem>>, vector<128x128xf32>
    %c0_4 = arith.constant 0 : index
    %c0_5 = arith.constant 0 : index
    %12 = vector.load %arg8[%c0_4, %c0_5] : memref<128x128xf32, #tpu.memory_space<vmem>>, vector<128x128xf32>
    %c0_6 = arith.constant 0 : index
    %c0_7 = arith.constant 0 : index
    %13 = vector.load %arg4[%c0_6, %c0_7] : memref<128x128xf32, #tpu.memory_space<vmem>>, vector<128x128xf32>
    %cst = arith.constant dense<0.000000e+00> : vector<128x128xf32>
    %14 = tpu.matmul %11, %13, %cst {dimension_numbers = #tpu.dot_dimension_numbers<[1], [1], [0], [0], [0, 0, 1, 0], [], []>} : vector<128x128xf32>, vector<128x128xf32>, vector<128x128xf32> -> vector<128x128xf32>
    %15 = arith.addf %12, %14 : vector<128x128xf32>
    %c0_8 = arith.constant 0 : index
    %c0_9 = arith.constant 0 : index
    %16 = vector.load %arg8[%c0_8, %c0_9] : memref<128x128xf32, #tpu.memory_space<vmem>>, vector<128x128xf32>
    tpu.vector_store %arg8[%c0_8, %c0_9], %15 {strides = array<i32>} : memref<128x128xf32, #tpu.memory_space<vmem>>, vector<128x128xf32>,
    %c0_i32_10 = arith.constant 0 : i32
    %17 = arith.cmpi eq, %arg2, %c0_i32_10 : i32
    %18 = arith.extui %17 : i1 to i32
    %c0_i32_11 = arith.constant 0 : i32
    %19 = arith.cmpi ne, %18, %c0_i32_11 : i32
    scf.if %19 {
      %c0_15 = arith.constant 0 : index
      %c0_16 = arith.constant 0 : index
      %25 = vector.load %arg8[%c0_15, %c0_16] : memref<128x128xf32, #tpu.memory_space<vmem>>, vector<128x128xf32>
      %c128_i32_17 = arith.constant 128 : i32
      %26 = arith.muli %arg0, %c128_i32_17 : i32
      %27 = tpu.iota {dimensions = array<i32: 0>} : vector<128x128xi32>
      %28 = vector.broadcast %26 : i32 to vector<128x128xi32>
      %29 = arith.addi %28, %27 : vector<128x128xi32>
      %c128_i32_18 = arith.constant 128 : i32
      %30 = arith.muli %arg1, %c128_i32_18 : i32
      %31 = tpu.iota {dimensions = array<i32: 1>} : vector<128x128xi32>
      %32 = vector.broadcast %30 : i32 to vector<128x128xi32>
      %33 = arith.addi %32, %31 : vector<128x128xi32>
      %c8_i32 = arith.constant 8 : i32
      %34 = vector.broadcast %c8_i32 : i32 to vector<128x128xi32>
      %35 = arith.cmpi slt, %29, %34 : vector<128x128xi32>
      %c8_i32_19 = arith.constant 8 : i32
      %36 = vector.broadcast %c8_i32_19 : i32 to vector<128x128xi32>
      %37 = arith.cmpi slt, %33, %36 : vector<128x128xi32>
      %38 = arith.andi %35, %37 : vector<128x128xi1>
      %c0_20 = arith.constant 0 : index
      %c0_21 = arith.constant 0 : index
      %39 = vector.load %arg5[%c0_20, %c0_21] : memref<128x1xi32, #tpu.memory_space<vmem>>, vector<128x1xi32>
      %c0_22 = arith.constant 0 : index
      %c0_23 = arith.constant 0 : index
      %40 = vector.load %arg6[%c0_22, %c0_23] : memref<1x128xi32, #tpu.memory_space<vmem>>, vector<1x128xi32>
      %41 = vector.broadcast %39 : vector<128x1xi32> to vector<128x128xi32>
      %42 = vector.broadcast %40 : vector<1x128xi32> to vector<128x128xi32>
      %43 = arith.cmpi eq, %41, %42 : vector<128x128xi32>
      %44 = arith.andi %43, %38 : vector<128x128xi1>
      %cst_24 = arith.constant 0.999989986 : f32
      %45 = vector.broadcast %cst_24 : f32 to vector<128x128xf32>
      %46 = arith.cmpf olt, %25, %45 : vector<128x128xf32>
      %cst_25 = arith.constant 1.000000e+00 : f32
      %47 = vector.broadcast %cst_25 : f32 to vector<128x128xf32>
      %48 = arith.subf %47, %25 : vector<128x128xf32>
      %cst_26 = arith.constant 0.000000e+00 : f32
      %49 = vector.broadcast %cst_26 : f32 to vector<128x128xf32>
      %50 = arith.select %46, %48, %49 : vector<128x128xi1>, vector<128x128xf32>
      %cst_27 = arith.constant 5.000000e-01 : f32
      %51 = vector.broadcast %cst_27 : f32 to vector<128x128xf32>
      %52 = arith.cmpf ogt, %25, %51 : vector<128x128xf32>
      %53 = arith.andi %38, %52 : vector<128x128xi1>
      %cst_28 = arith.constant 0.000000e+00 : f32
      %54 = vector.broadcast %cst_28 : f32 to vector<128x128xf32>
      %55 = arith.select %53, %25, %54 : vector<128x128xi1>, vector<128x128xf32>
      %56 = arith.select %44, %50, %55 : vector<128x128xi1>, vector<128x128xf32>
      %c0_29 = arith.constant 0 : index
      %c0_30 = arith.constant 0 : index
      %57 = vector.load %arg9[%c0_29, %c0_30] : memref<128x1xf32, #tpu.memory_space<vmem>>, vector<128x1xf32>
      %cst_31 = arith.constant dense<0.000000e+00> : vector<128xf32>
      %58 = vector.multi_reduction <add>, %56, %cst_31 [1] : vector<128x128xf32> to vector<128xf32>
      %59 = vector.shape_cast %58 : vector<128xf32> to vector<128x1xf32>
      %60 = arith.addf %57, %59 : vector<128x1xf32>
      %c0_32 = arith.constant 0 : index
      %c0_33 = arith.constant 0 : index
      %61 = vector.load %arg9[%c0_32, %c0_33] : memref<128x1xf32, #tpu.memory_space<vmem>>, vector<128x1xf32>
      tpu.vector_store %arg9[%c0_32, %c0_33], %60 {strides = array<i32>} : memref<128x1xf32, #tpu.memory_space<vmem>>, vector<128x1xf32>,
    } else {
    }
    %c0_i32_12 = arith.constant 0 : i32
    %20 = arith.cmpi eq, %arg1, %c0_i32_12 : i32
    %c0_i32_13 = arith.constant 0 : i32
    %21 = arith.cmpi eq, %arg2, %c0_i32_13 : i32
    %22 = arith.andi %20, %21 : i1
    %23 = arith.extui %22 : i1 to i32
    %c0_i32_14 = arith.constant 0 : i32
    %24 = arith.cmpi ne, %23, %c0_i32_14 : i32
    scf.if %24 {
      %c0_15 = arith.constant 0 : index
      %c0_16 = arith.constant 0 : index
      %25 = vector.load %arg9[%c0_15, %c0_16] : memref<128x1xf32, #tpu.memory_space<vmem>>, vector<128x1xf32>
      %c0_17 = arith.constant 0 : index
      %c0_18 = arith.constant 0 : index
      %26 = vector.load %arg7[%c0_17, %c0_18] : memref<128x1xf32, #tpu.memory_space<vmem>>, vector<128x1xf32>
      tpu.vector_store %arg7[%c0_17, %c0_18], %25 {strides = array<i32>} : memref<128x1xf32, #tpu.memory_space<vmem>>, vector<128x1xf32>,
    } else {
    }
    return
  }
  func.func @transform_0(%arg0: i32, %arg1: i32, %arg2: i32) -> (i32, i32) {
    %c0_i32 = arith.constant 0 : i32
    %c0_i32_0 = arith.constant 0 : i32
    return %arg0, %c0_i32 : i32, i32
  }
  func.func @transform_1(%arg0: i32, %arg1: i32, %arg2: i32) -> (i32, i32) {
    %c0_i32 = arith.constant 0 : i32
    return %arg1, %arg2 : i32, i32
  }
  func.func @transform_2(%arg0: i32, %arg1: i32, %arg2: i32) -> (i32, i32) {
    %c0_i32 = arith.constant 0 : i32
    %c0_i32_0 = arith.constant 0 : i32
    return %arg0, %c0_i32 : i32, i32
  }
  func.func @transform_3(%arg0: i32, %arg1: i32, %arg2: i32) -> (i32, i32) {
    %c0_i32 = arith.constant 0 : i32
    %c0_i32_0 = arith.constant 0 : i32
    return %c0_i32, %arg1 : i32, i32
  }
  func.func @transform_4(%arg0: i32, %arg1: i32, %arg2: i32) -> (i32, i32) {
    %c0_i32 = arith.constant 0 : i32
    %c0_i32_0 = arith.constant 0 : i32
    return %arg0, %c0_i32 : i32, i32
  }
}

</mosaic_0001>

<bundles_post_ra>
// kernel: tpu_custom_call.1
= control target key start
LH: loop header
LB: loop body
LE: loop exit
PB: predicated region body
PF: predicated region fallthrough
CT: control target
= control target key end

     0   :  { %9 = vsyncpa [#allocation5], 0  ;;  %s1095_s0 = inlined_call_operand.vmem [shape: f32[8,128], index: 0, kind: input, shape index: {}]   ;;  %s1096_s1 = inlined_call_operand.hbm [shape: f32[8,128], index: 1, kind: input, shape index: {}]   ;;  %s1097_s2 = inlined_call_operand.vmem [shape: s32[8,1], index: 2, kind: input, shape index: {}]   ;;  %s1098_s3 = inlined_call_operand.vmem [shape: s32[1,8], index: 3, kind: input, shape index: {}]   ;;  %s1099_s4 = inlined_call_operand.vmem [shape: f32[8,1], index: 4, kind: output, shape index: {}]  }
   0x1   :  { %16 = vsyncadd [#allocation5], 1920  ;;  %s932_s15 = smov [#allocation4]   ;;  %s908_s19 = scalar_lea.hbm %s1096_s1, 128 }
   0x2   :  { %s17_s16 = sshll.u32 %s932_s15, 4  ;;  %p909_p0 = scmp.ne.s32.totalorder %s1096_s1, %s908_s19  ;;  %s18_s16 = int_to_ptr.vmem [resolvable:$true] %s17_s16 }
   0x3   :  { %p912_p1 = scmp.lt.u32.totalorder %s908_s19, %s1096_s1 }
   0x5   :  { %p914_p2 = pnand %p912_p1, %p909_p0 }
   0x7   :  { %917 = shalt.err (!%p914_p2)
}
   0x8   :  { %s918_s24 = scalar_lea.vmem %s18_s16, 128  ;;  %s922_s25 = scalar_lea.vmem %s18_s16, 2048 }
   0x9   :  { %p919_p3 = scmp.ne.s32.totalorder %s18_s16, %s918_s24  ;;  %p923_p4 = scmp.lt.s32.totalorder %s18_s16, %s18_s16 }
   0xa   :  { %p924_p5 = scmp.lt.s32.totalorder %s922_s25, %s918_s24 }
   0xc   :  { %p925_p6 = por %p924_p5, %p923_p4 }
   0xe   :  { %p926_p7 = pnand %p925_p6, %p919_p3 }
  0x10   :  { %929 = shalt.err (!%p926_p7)
}
  0x11   :  { %s933_s26 = smov 128   ;;  %s934_s27 = smov 8  }
  0x12   :  { %23 = dma.hbm_to_vmem [thread:$0]  %s1096_s1, 128, %s18_s16, [#allocation5], %s933_s26, %s933_s26, %s934_s27  }
  0x13   :  { %930 = dma.done.wait [#allocation5], 2048  }
  0x14   :  { %931 = vsyncadd [#allocation5], 4294965248  ;;  %v935_v0 = vmov 0   ;;  %v936_v1 = vmov 0.0   ;;  %v109_v2 = vld [vmem:[#allocation4] sm:$0xff]  ;;  %v110_v3 = vld [vmem:[#allocation4 + $0x8] sm:$0xff] }
  0x15   :  { %907 = vset.pattern.permute.xlu0 %v935_v0  ;;  %625 = vadd.xlane.f32.xlu1 %v936_v1  ;;  %v111_v4 = vld [vmem:[#allocation4 + $0x10] sm:$0xff]  ;;  %v854_v5 = vpack.c.bf16 %v110_v3, %v109_v2  ;;  %v112_v6 = vld [vmem:[#allocation4 + $0x18] sm:$0xff]  ;;  %v113_v8 = vld [vmem:[#allocation4 + $0x20] sm:$0xff]  ;;  %vm56_vm0 = vcmask 7168  }
  0x16   :  { %v858_v7 = vpack.c.bf16 %v112_v6, %v111_v4  ;;  %v77_v9 = vld [vmem:[%s1095_s0] sm:$0xff]  ;;  %v114_v10 = vld [vmem:[#allocation4 + $0x28] sm:$0xff]  ;;  %v115_v14 = vld [vmem:[#allocation4 + $0x30] sm:$0xff]  ;;  %58 = vst.msk [vmem:[#allocation3 + $0x8] sm:$0xff] %vm56_vm0, %v936_v1 }
  0x17   :  { %855 = vmatprep.subr.bf16.mxu0 %v854_v5  ;;  %886 = vmatprep.subr.bf16.mxu1 %v854_v5  ;;  %v394_v11 = vld [vmem:[%s1097_s2] sm:$0xff]  ;;  %v862_v13 = vpack.c.bf16 %v114_v10, %v113_v8  ;;  %v116_v15 = vld [vmem:[#allocation4 + $0x38] sm:$0xff]  ;;  %v118_v18 = vld [vmem:[#allocation4 + $0x48] sm:$0xff]  ;;  %57 = vst.msk [vmem:[#allocation3] sm:$0xff] %vm56_vm0, %v936_v1 }
  0x18   :  { %857 = vmatpush3.bf16.xpose.msra.mxu0 %v854_v5  ;;  %894 = vmatpush3.bf16.xpose.msra.mxu1 %v854_v5  ;;  %v85_v12 = vld [vmem:[%s1095_s0 + $0x40] sm:$0xff]  ;;  %v866_v16 = vpack.c.bf16 %v116_v15, %v115_v14  ;;  %v119_v20 = vld [vmem:[#allocation4 + $0x50] sm:$0xff]  ;;  %v120_v21 = vld [vmem:[#allocation4 + $0x58] sm:$0xff]  ;;  %59 = vst.msk [vmem:[#allocation3 + $0x10] sm:$0xff] %vm56_vm0, %v936_v1  ;;  %v357_v14 = vlaneseq }
  0x19   :  { %627 = vadd.xlane.f32.xlu1 %v936_v1  ;;  %859 = vmatprep.subr.bf16.mxu0 %v858_v7  ;;  %v117_v17 = vld [vmem:[#allocation4 + $0x40] sm:$0xff]  ;;  %v874_v22 = vpack.c.bf16 %v120_v21, %v119_v20  ;;  %v122_v24 = vld [vmem:[#allocation4 + $0x68] sm:$0xff]  ;;  %v123_v26 = vld [vmem:[#allocation4 + $0x70] sm:$0xff]  ;;  %60 = vst.msk [vmem:[#allocation3 + $0x18] sm:$0xff] %vm56_vm0, %v936_v1 }
  0x1a   :  { %887 = vmatprep.subr.bf16.mxu1 %v858_v7  ;;  %830 = vmatprep.mubr.f32.mxu0 %v77_v9  ;;  %v870_v19 = vpack.c.bf16 %v118_v18, %v117_v17  ;;  %v121_v23 = vld [vmem:[#allocation4 + $0x60] sm:$0xff]  ;;  %v124_v27 = vld [vmem:[#allocation4 + $0x78] sm:$0xff]  ;;  %v78_v29 = vld [vmem:[%s1095_s0 + $0x8] sm:$0xff]  ;;  %61 = vst.msk [vmem:[#allocation3 + $0x20] sm:$0xff] %vm56_vm0, %v936_v1  ;;  %v358_v15 = vand.u32 127, %v357_v14 }
  0x1b   :  { %412 = vperm.xlu0 %907, %v394_v11   ;;  %842 = vmatprep.mubr.f32.mxu1 %v85_v12  ;;  %v878_v25 = vpack.c.bf16 %v122_v24, %v121_v23  ;;  %v882_v28 = vpack.c.bf16 %v124_v27, %v123_v26  ;;  %v86_v30 = vld [vmem:[%s1095_s0 + $0x48] sm:$0xff]  ;;  %v79_v31 = vld [vmem:[%s1095_s0 + $0x10] sm:$0xff]  ;;  %v80_v33 = vld [vmem:[%s1095_s0 + $0x18] sm:$0xff]  ;;  %62 = vst.msk [vmem:[#allocation3 + $0x28] sm:$0xff] %vm56_vm0, %v936_v1 }
  0x1c   :  { %v87_v32 = vld [vmem:[%s1095_s0 + $0x50] sm:$0xff]  ;;  %v88_v34 = vld [vmem:[%s1095_s0 + $0x58] sm:$0xff]  ;;  %v81_v35 = vld [vmem:[%s1095_s0 + $0x20] sm:$0xff]  ;;  %63 = vst.msk [vmem:[#allocation3 + $0x30] sm:$0xff] %vm56_vm0, %v936_v1  ;;  %vm377_vm1 = vcmp.lt.s32.totalorder %v358_v15, 8 }
  0x1d   :  { %629 = vadd.xlane.f32.xlu1 %v936_v1  ;;  %v89_v36 = vld [vmem:[%s1095_s0 + $0x60] sm:$0xff]  ;;  %v82_v37 = vld [vmem:[%s1095_s0 + $0x28] sm:$0xff]  ;;  %v83_v39 = vld [vmem:[%s1095_s0 + $0x30] sm:$0xff]  ;;  %64 = vst.msk [vmem:[#allocation3 + $0x38] sm:$0xff] %vm56_vm0, %v936_v1 }
  0x1e   :  { %v90_v38 = vld [vmem:[%s1095_s0 + $0x68] sm:$0xff]  ;;  %v91_v40 = vld [vmem:[%s1095_s0 + $0x70] sm:$0xff]  ;;  %v84_v41 = vld [vmem:[%s1095_s0 + $0x38] sm:$0xff]  ;;  %65 = vst.msk [vmem:[#allocation3 + $0x40] sm:$0xff] %vm56_vm0, %v936_v1 }
  0x1f   :  { %v92_v42 = vld [vmem:[%s1095_s0 + $0x78] sm:$0xff]  ;;  %66 = vst.msk [vmem:[#allocation3 + $0x48] sm:$0xff] %vm56_vm0, %v936_v1  ;;  %67 = vst.msk [vmem:[#allocation3 + $0x50] sm:$0xff] %vm56_vm0, %v936_v1  ;;  %v608_v45 = vld [vmem:[#allocation3 + $0x8] sm:$0xff] }
  0x20   :  { %861 = vmatpush3.bf16.xpose.msra.mxu0 %v858_v7  ;;  %895 = vmatpush3.bf16.xpose.msra.mxu1 %v858_v7  ;;  %68 = vst.msk [vmem:[#allocation3 + $0x58] sm:$0xff] %vm56_vm0, %v936_v1  ;;  %69 = vst.msk [vmem:[#allocation3 + $0x60] sm:$0xff] %vm56_vm0, %v936_v1  ;;  %v609_v46 = vld [vmem:[#allocation3 + $0x10] sm:$0xff]  ;;  %v610_v48 = vld [vmem:[#allocation3 + $0x18] sm:$0xff] }
  0x21   :  { %631 = vadd.xlane.f32.xlu1 %v936_v1  ;;  %863 = vmatprep.subr.bf16.mxu0 %v862_v13  ;;  %70 = vst.msk [vmem:[#allocation3 + $0x68] sm:$0xff] %vm56_vm0, %v936_v1  ;;  %71 = vst.msk [vmem:[#allocation3 + $0x70] sm:$0xff] %vm56_vm0, %v936_v1  ;;  %v611_v52 = vld [vmem:[#allocation3 + $0x20] sm:$0xff] }
  0x22   :  { %888 = vmatprep.subr.bf16.mxu1 %v862_v13  ;;  %72 = vst.msk [vmem:[#allocation3 + $0x78] sm:$0xff] %vm56_vm0, %v936_v1  ;;  %v612_v57 = vld [vmem:[#allocation3 + $0x28] sm:$0xff] }
  0x23   :  { %v613_v62 = vld [vmem:[#allocation3 + $0x30] sm:$0xff] }
  0x24   :  { %v614_v2 = vld [vmem:[#allocation3 + $0x38] sm:$0xff] }
  0x25   :  { %633 = vadd.xlane.f32.xlu1 %v936_v1  ;;  %v615_v5 = vld [vmem:[#allocation3 + $0x40] sm:$0xff] }
  0x26   :  { %v617_v56 = vld [vmem:[#allocation3 + $0x50] sm:$0xff]  ;;  %v616_v8 = vld [vmem:[#allocation3 + $0x48] sm:$0xff] }
  0x27   :  { %v618_v11 = vld [vmem:[#allocation3 + $0x58] sm:$0xff] }
  0x28   :  { %865 = vmatpush3.bf16.xpose.msra.mxu0 %v862_v13  ;;  %896 = vmatpush3.bf16.xpose.msra.mxu1 %v862_v13 }
  0x29   :  { %635 = vadd.xlane.f32.xlu1 %v936_v1  ;;  %867 = vmatprep.subr.bf16.mxu0 %v866_v16 }
  0x2a   :  { %889 = vmatprep.subr.bf16.mxu1 %v866_v16 }
  0x2d   :  { %637 = vadd.xlane.f32.xlu1 %v936_v1 }
  0x30   :  { %869 = vmatpush3.bf16.xpose.msra.mxu0 %v866_v16  ;;  %897 = vmatpush3.bf16.xpose.msra.mxu1 %v866_v16  ;;  %v765_v16 = vld [vmem:[%s1098_s3] ss:$0 sm:$0xff] }
  0x31   :  { %639 = vadd.xlane.f32.xlu1 %v936_v1  ;;  %871 = vmatprep.subr.bf16.mxu0 %v870_v19 }
  0x32   :  { %890 = vmatprep.subr.bf16.mxu1 %v870_v19 }
  0x35   :  { %641 = vadd.xlane.f32.xlu1 %v936_v1 }
  0x38   :  { %873 = vmatpush3.bf16.xpose.msra.mxu0 %v870_v19  ;;  %898 = vmatpush3.bf16.xpose.msra.mxu1 %v870_v19 }
  0x39   :  { %645 = vadd.xlane.f32.xlu1 %v936_v1  ;;  %875 = vmatprep.subr.bf16.mxu0 %v874_v22 }
  0x3a   :  { %891 = vmatprep.subr.bf16.mxu1 %v874_v22  ;;  %643 = vadd.xlane.f32.xlu0 %v936_v1 }
  0x3d   :  { %649 = vadd.xlane.f32.xlu1 %v936_v1 }
  0x40   :  { %877 = vmatpush3.bf16.xpose.msra.mxu0 %v874_v22  ;;  %899 = vmatpush3.bf16.xpose.msra.mxu1 %v874_v22 }
  0x41   :  { %653 = vadd.xlane.f32.xlu1 %v936_v1  ;;  %879 = vmatprep.subr.bf16.mxu0 %v878_v25 }
  0x42   :  { %892 = vmatprep.subr.bf16.mxu1 %v878_v25 }
  0x48   :  { %881 = vmatpush3.bf16.xpose.msra.mxu0 %v878_v25  ;;  %900 = vmatpush3.bf16.xpose.msra.mxu1 %v878_v25 }
  0x49   :  { %883 = vmatprep.subr.bf16.mxu0 %v882_v28  ;;  %893 = vmatprep.subr.bf16.mxu1 %v882_v28 }
  0x50   :  { %885 = vmatpush3.bf16.xpose.msra.mxu0 %v882_v28  ;;  %901 = vmatpush3.bf16.xpose.msra.mxu1 %v882_v28 }
  0x57   :  { %831 = vmatmul.mubr.f32.vlgmr.msra.gmra.mrb[0].mxu0 %v78_v29  ;;  %843 = vmatmul.mubr.f32.vlgmr.msra.gmra.mrb[0].mxu1 %v86_v30 }
  0x58   :  { %833 = vmatprep.mubr.f32.mxu0 %v79_v31  ;;  %845 = vmatprep.mubr.f32.mxu1 %v87_v32 }
  0x5b   :  { %834 = vmatmul.mubr.f32.gmra.mrb[2].mxu0 %v80_v33  ;;  %846 = vmatmul.mubr.f32.gmra.mrb[2].mxu1 %v88_v34 }
  0x5c   :  { %836 = vmatprep.mubr.f32.mxu0 %v81_v35  ;;  %848 = vmatprep.mubr.f32.mxu1 %v89_v36 }
  0x5f   :  { %837 = vmatmul.mubr.f32.gmra.mrb[4].mxu0 %v82_v37  ;;  %849 = vmatmul.mubr.f32.gmra.mrb[4].mxu1 %v90_v38  ;;  %v620_v38 = vld [vmem:[#allocation3 + $0x68] sm:$0xff] }
  0x60   :  { %839 = vmatprep.mubr.f32.mxu0 %v83_v39  ;;  %851 = vmatprep.mubr.f32.mxu1 %v91_v40 }
  0x63   :  { %840 = vmatmul.mubr.f32.gmra.mrb[6].mxu0 %v84_v41  ;;  %852 = vmatmul.mubr.f32.gmra.mrb[6].mxu1 %v92_v42  ;;  %v622_v41 = vld [vmem:[#allocation3 + $0x78] sm:$0xff] }
  0x9a   :  { %v413_v53 = vpop.permute.xlu0 %412 }
  0x9b   :  { %vm463_vm2 = vcmp.eq.s32.totalorder %v413_v53, %v765_v16 }
  0x9c   :  { %vm479_vm3 = vmand %vm463_vm2, %vm377_vm1 }
  0xa2   :  { %v626_v43 = vpop.xlane.xlu1 %625 }
  0xa3   :  { %v656_v49 = vadd.f32 %v626_v43, %v608_v45  ;;  %v607_v43 = vld [vmem:[#allocation3] sm:$0xff] }
  0xa5   :  { %673 = vst.msk [vmem:[#allocation3 + $0x8] sm:$0xff] %vm56_vm0, %v656_v49  ;;  %v621_v49 = vld [vmem:[#allocation3 + $0x70] sm:$0xff] }
  0xa6   :  { %v628_v44 = vpop.xlane.xlu1 %627 }
  0xa7   :  { %v657_v50 = vadd.f32 %v628_v44, %v609_v46  ;;  %v619_v46 = vld [vmem:[#allocation3 + $0x60] sm:$0xff] }
  0xa9   :  { %674 = vst.msk [vmem:[#allocation3 + $0x10] sm:$0xff] %vm56_vm0, %v657_v50 }
  0xaa   :  { %v630_v47 = vpop.xlane.xlu1 %629 }
  0xab   :  { %v658_v51 = vadd.f32 %v630_v47, %v610_v48 }
  0xad   :  { %675 = vst.msk [vmem:[#allocation3 + $0x18] sm:$0xff] %vm56_vm0, %v658_v51 }
  0xae   :  { %v632_v54 = vpop.xlane.xlu1 %631 }
  0xaf   :  { %v659_v55 = vadd.f32 %v632_v54, %v611_v52 }
  0xb1   :  { %676 = vst.msk [vmem:[#allocation3 + $0x20] sm:$0xff] %vm56_vm0, %v659_v55 }
  0xb2   :  { %v634_v59 = vpop.xlane.xlu1 %633 }
  0xb3   :  { %v660_v61 = vadd.f32 %v634_v59, %v612_v57 }
  0xb5   :  { %677 = vst.msk [vmem:[#allocation3 + $0x28] sm:$0xff] %vm56_vm0, %v660_v61 }
  0xb6   :  { %v636_v63 = vpop.xlane.xlu1 %635 }
  0xb7   :  { %v661_v0 = vadd.f32 %v636_v63, %v613_v62 }
  0xb9   :  { %678 = vst.msk [vmem:[#allocation3 + $0x30] sm:$0xff] %vm56_vm0, %v661_v0 }
  0xba   :  { %v638_v3 = vpop.xlane.xlu1 %637 }
  0xbb   :  { %v662_v4 = vadd.f32 %v638_v3, %v614_v2 }
  0xbd   :  { %679 = vst.msk [vmem:[#allocation3 + $0x38] sm:$0xff] %vm56_vm0, %v662_v4 }
  0xbe   :  { %v640_v6 = vpop.xlane.xlu1 %639 }
  0xbf   :  { %v663_v7 = vadd.f32 %v640_v6, %v615_v5 }
  0xc1   :  { %680 = vst.msk [vmem:[#allocation3 + $0x40] sm:$0xff] %vm56_vm0, %v663_v7 }
  0xc2   :  { %v642_v9 = vpop.xlane.xlu1 %641 }
  0xc3   :  { %v664_v10 = vadd.f32 %v642_v9, %v616_v8 }
  0xc5   :  { %681 = vst.msk [vmem:[#allocation3 + $0x48] sm:$0xff] %vm56_vm0, %v664_v10 }
  0xc6   :  { %v646_v12 = vpop.xlane.xlu1 %645 }
  0xc7   :  { %v644_v58 = vpop.xlane.xlu0 %643  ;;  %v666_v13 = vadd.f32 %v646_v12, %v618_v11 }
  0xc8   :  { %v665_v60 = vadd.f32 %v644_v58, %v617_v56 }
  0xc9   :  { %683 = vst.msk [vmem:[#allocation3 + $0x58] sm:$0xff] %vm56_vm0, %v666_v13 }
  0xca   :  { %682 = vst.msk [vmem:[#allocation3 + $0x50] sm:$0xff] %vm56_vm0, %v665_v60  ;;  %v650_v37 = vpop.xlane.xlu1 %649 }
  0xcb   :  { %v668_v39 = vadd.f32 %v650_v37, %v620_v38 }
  0xcd   :  { %685 = vst.msk [vmem:[#allocation3 + $0x68] sm:$0xff] %vm56_vm0, %v668_v39 }
  0xce   :  { %v654_v40 = vpop.xlane.xlu1 %653 }
  0xcf   :  { %v670_v42 = vadd.f32 %v654_v40, %v622_v41 }
  0xd1   :  { %687 = vst.msk [vmem:[#allocation3 + $0x78] sm:$0xff] %vm56_vm0, %v670_v42 }
 0x12a   :  { %v832_v17 = vpop.f32.mrb[0].mxu0  ;;  %v844_v18 = vpop.f32.mrb[0].mxu1 }
 0x12b   :  { %v191_v19 = vpop.f32.mrb[1].mxu0  ;;  %v231_v20 = vpop.f32.mrb[1].mxu1 }
 0x12c   :  { %vm543_vm4 = vcmp.gt.f32.partialorder %v191_v19, 0.5  ;;  %vm495_vm5 = vcmp.lt.f32.partialorder %v191_v19, 0.99999  ;;  %v511_v21 = vsub.f32 1.0, %v191_v19 }
 0x12d   :  { %vm559_vm6 = vmand %vm377_vm1, %vm543_vm4 }
 0x12e   :  { %v527_v22 = vsel %vm495_vm5, %v511_v21, 0.0  ;;  %v575_v23 = vsel %vm559_vm6, %v191_v19, 0.0  ;;  %v835_v24 = vpop.f32.mrb[2].mxu0  ;;  %v847_v25 = vpop.f32.mrb[2].mxu1 }
 0x12f   :  { %v591_v26 = vsel %vm479_vm3, %v527_v22, %v575_v23  ;;  %v201_v27 = vpop.f32.mrb[3].mxu0  ;;  %v241_v28 = vpop.f32.mrb[3].mxu1 }
 0x130   :  { %623 = vadd.xlane.f32.xlu0 %v591_v26 }
 0x132   :  { %v838_v29 = vpop.f32.mrb[4].mxu0  ;;  %v850_v30 = vpop.f32.mrb[4].mxu1 }
 0x133   :  { %v211_v31 = vpop.f32.mrb[5].mxu0  ;;  %v251_v32 = vpop.f32.mrb[5].mxu1 }
 0x134   :  { %647 = vadd.xlane.f32.xlu0 %v936_v1 }
 0x136   :  { %v841_v33 = vpop.f32.mrb[6].mxu0  ;;  %v853_v34 = vpop.f32.mrb[6].mxu1 }
 0x137   :  { %v221_v35 = vpop.f32.mrb[7].mxu0  ;;  %v261_v36 = vpop.f32.mrb[7].mxu1 }
 0x138   :  { %651 = vadd.xlane.f32.xlu0 %v936_v1 }
 0x1bd   :  { %v624_v44 = vpop.xlane.xlu0 %623 }
 0x1be   :  { %v655_v45 = vadd.f32 %v624_v44, %v607_v43 }
 0x1c0   :  { %672 = vst.msk [vmem:[#allocation3] sm:$0xff] %vm56_vm0, %v655_v45 }
 0x1c1   :  { %v648_v47 = vpop.xlane.xlu0 %647 }
 0x1c2   :  { %v667_v48 = vadd.f32 %v648_v47, %v619_v46 }
 0x1c4   :  { %684 = vst.msk [vmem:[#allocation3 + $0x60] sm:$0xff] %vm56_vm0, %v667_v48 }
 0x1c5   :  { %v652_v1 = vpop.xlane.xlu0 %651 }
 0x1c6   :  { %v669_v50 = vadd.f32 %v652_v1, %v621_v49 }
 0x1c7   :  { %v690_v51 = vld [vmem:[#allocation3] sm:$0xff] }
 0x1c8   :  { %707 = vst.msk [vmem:[#allocation6] sm:$0xff] %vm56_vm0, %v690_v51  ;;  %686 = vst.msk [vmem:[#allocation3 + $0x70] sm:$0xff] %vm56_vm0, %v669_v50 }
 0x1cf   :  { %v752_v52 = vld [vmem:[#allocation6] sm:$0xff] }
 0x1d0   :  { %753 = vst [vmem:[%s1099_s4] sm:$0xff] %v752_v52 }
 0x1d1   :  { %759 = vsyncpa [#allocation5], 1 }

</bundles_post_ra>
